<compile_context>
chip_gen: v7x
topology: tpu7x:2x2x1
jax: 0.10.0
libtpu: 0.0.40
codegen_flags: <defaults>
</compile_context>

<pallas_src>
import functools

import jax
import jax.numpy as jnp
from jax.experimental import pallas as pl
from jax.experimental.pallas import tpu as pltpu

DEFAULT_TILE_B = 4096   # max batch rows per grid step (multiple of 8)


def _round_up(n: int, m: int) -> int:
    return ((n + m - 1) // m) * m


def actor_critic_kernel(x_ref, w1_ref, b1_ref, wh_ref, bh_ref, out_ref):
    # hidden = tanh(x @ W1 + b1): MXU matmul, VPU bias add, EUP tanh.
    h = jnp.tanh(
        jnp.dot(x_ref[...], w1_ref[...], preferred_element_type=jnp.float32)
        + b1_ref[...]
    )
    # Fused actor+critic head: one MXU pass; output width is the real head
    # width (rounded to 8), so the HBM writeback carries no 128-lane padding.
    out_ref[...] = (
        jnp.dot(h, wh_ref[...], preferred_element_type=jnp.float32) + bh_ref[...]
    )


def pack_params(raw):
    """Pack actor/critic heads into one narrow fused weight/bias (host-side, once)."""
    w1, b1 = raw["w1"], raw["b1"]
    wa, ba, wc, bc = raw["wa"], raw["ba"], raw["wc"], raw["bc"]
    hidden = w1.shape[1]
    heads = wa.shape[1] + wc.shape[1]          # output_dim + 1
    head_pad = _round_up(heads, 8)             # sublane-friendly, no 128-lane padding

    w_heads = jnp.zeros((hidden, head_pad), jnp.float32)
    w_heads = w_heads.at[:, : wa.shape[1]].set(wa)
    w_heads = w_heads.at[:, wa.shape[1]: heads].set(wc)

    b_heads = jnp.zeros((1, head_pad), jnp.float32)
    b_heads = b_heads.at[:, : wa.shape[1]].set(ba)
    b_heads = b_heads.at[:, wa.shape[1]: heads].set(bc)

    return {"w1": w1, "b1": b1, "w_heads": w_heads, "b_heads": b_heads}


@functools.partial(jax.jit, static_argnums=(2, 3))
def actor_critic_forward(x, packed, output_dim, tile_b=DEFAULT_TILE_B):
    """x: (B, input_dim) f32. Returns (logits (B, output_dim), value (B, 1))."""
    w1, b1 = packed["w1"], packed["b1"]
    wh, bh = packed["w_heads"], packed["b_heads"]
    B, input_dim = x.shape
    hidden = w1.shape[1]
    head = wh.shape[1]                         # output_dim + 1 rounded up to 8

    # Batch tile: split into >= 2 grid steps when possible (v7x megacore),
    # capped at tile_b, always a multiple of 8.  No jnp.pad of x: Pallas masks
    # the ragged last tile's writeback, so reads past B are computed-and-discarded.
    tile = max(8, min(int(tile_b), _round_up(pl.cdiv(B, 2), 8)))
    grid = (pl.cdiv(B, tile),)

    cost = pl.CostEstimate(
        flops=2 * B * (input_dim * hidden + hidden * head),
        transcendentals=B * hidden,
        bytes_accessed=4 * (B * input_dim + w1.size + b1.size
                            + wh.size + bh.size + B * head),
    )

    out = pl.pallas_call(
        actor_critic_kernel,
        out_shape=jax.ShapeDtypeStruct((B, head), jnp.float32),
        grid=grid,
        in_specs=[
            pl.BlockSpec((tile, input_dim), lambda i: (i, 0)),  # streamed batch tile
            pl.BlockSpec(w1.shape, lambda i: (0, 0)),           # VMEM-resident weights
            pl.BlockSpec(b1.shape, lambda i: (0, 0)),
            pl.BlockSpec(wh.shape, lambda i: (0, 0)),
            pl.BlockSpec(bh.shape, lambda i: (0, 0)),
        ],
        out_specs=pl.BlockSpec((tile, head), lambda i: (i, 0)),
        compiler_params=pltpu.CompilerParams(
            dimension_semantics=("parallel",),                   # megacore shard on v7x
        ),
        cost_estimate=cost,
    )(x, w1, b1, wh, bh)

    logits = out[:, :output_dim]
    value = out[:, output_dim: output_dim + 1]
    return logits, value


def init_params(key, input_dim, hidden_dim, output_dim):
    """Deterministic init mimicking PyTorch nn.Linear default (U(-1/sqrt(fan_in), +))."""
    ks = jax.random.split(key, 6)

    def lin(kw, kb, fan_in, fan_out):
        bound = 1.0 / jnp.sqrt(jnp.float32(fan_in))
        w = jax.random.uniform(kw, (fan_in, fan_out), jnp.float32, -bound, bound)
        b = jax.random.uniform(kb, (1, fan_out), jnp.float32, -bound, bound)
        return w, b

    w1, b1 = lin(ks[0], ks[1], input_dim, hidden_dim)
    wa, ba = lin(ks[2], ks[3], hidden_dim, output_dim)
    wc, bc = lin(ks[4], ks[5], hidden_dim, 1)
    return {"w1": w1, "b1": b1, "wa": wa, "ba": ba, "wc": wc, "bc": bc}


if __name__ == "__main__":
    input_dim, hidden_dim, output_dim = 5, 32, 4
    batch = 8

    key = jax.random.PRNGKey(0)
    k_params, k_x = jax.random.split(key)

    raw = init_params(k_params, input_dim, hidden_dim, output_dim)
    packed = pack_params(raw)
    x = jax.random.normal(k_x, (batch, input_dim), dtype=jnp.float32)

    logits, value = actor_critic_forward(x, packed, output_dim)
    jax.block_until_ready((logits, value))

    # Reference check in plain JAX (same math as the PyTorch forward).
    h_ref = jnp.tanh(x @ raw["w1"] + raw["b1"])
    logits_ref = h_ref @ raw["wa"] + raw["ba"]
    value_ref = h_ref @ raw["wc"] + raw["bc"]
    assert logits.shape == (batch, output_dim) and value.shape == (batch, 1)
    assert jnp.allclose(logits, logits_ref, atol=1e-4)
    assert jnp.allclose(value, value_ref, atol=1e-4)

    # Larger, non-tile-divisible batch exercises the multi-step ragged grid path.
    xb = jax.random.normal(jax.random.PRNGKey(1), (1000, input_dim), jnp.float32)
    lb, vb = actor_critic_forward(xb, packed, output_dim)
    jax.block_until_ready((lb, vb))
    hb = jnp.tanh(xb @ raw["w1"] + raw["b1"])
    assert jnp.allclose(lb, hb @ raw["wa"] + raw["ba"], atol=1e-4)
    assert jnp.allclose(vb, hb @ raw["wc"] + raw["bc"], atol=1e-4)

    print("KERNEL_OK")
</pallas_src>

<mosaic_0001>
module attributes {stable_mosaic.version = 11 : i64} {
  func.func @actor_critic_kernel(%arg0: i32, %arg1: memref<8x5xf32, #tpu.memory_space<vmem>>, %arg2: memref<5x32xf32, #tpu.memory_space<vmem>>, %arg3: memref<1x32xf32, #tpu.memory_space<vmem>>, %arg4: memref<32x8xf32, #tpu.memory_space<vmem>>, %arg5: memref<1x8xf32, #tpu.memory_space<vmem>>, %arg6: memref<8x8xf32, #tpu.memory_space<vmem>>) attributes {dimension_semantics = [#tpu.dimension_semantics<parallel>], iteration_bounds = array<i64: 1>, scalar_prefetch = 0 : i64, scratch_operands = 0 : i64, tpu.core_type = #tpu.core_type<tc>, window_params = [{transform_indices = @transform_0, window_bounds = array<i64: 8, 5>}, {pipeline_mode = #tpu.pipeline_mode<synchronous>, transform_indices = @transform_1, window_bounds = array<i64: 5, 32>}, {pipeline_mode = #tpu.pipeline_mode<synchronous>, transform_indices = @transform_2, window_bounds = array<i64: 1, 32>}, {pipeline_mode = #tpu.pipeline_mode<synchronous>, transform_indices = @transform_3, window_bounds = array<i64: 32, 8>}, {pipeline_mode = #tpu.pipeline_mode<synchronous>, transform_indices = @transform_4, window_bounds = array<i64: 1, 8>}, {transform_indices = @transform_5, window_bounds = array<i64: 8, 8>}]} {
    %c0 = arith.constant 0 : index
    %c0_0 = arith.constant 0 : index
    %0 = vector.load %arg1[%c0, %c0_0] : memref<8x5xf32, #tpu.memory_space<vmem>>, vector<8x5xf32>
    %c0_1 = arith.constant 0 : index
    %c0_2 = arith.constant 0 : index
    %1 = vector.load %arg2[%c0_1, %c0_2] : memref<5x32xf32, #tpu.memory_space<vmem>>, vector<5x32xf32>
    %cst = arith.constant dense<0.000000e+00> : vector<8x32xf32>
    %2 = tpu.matmul %0, %1, %cst {dimension_numbers = #tpu.dot_dimension_numbers<[1], [0], [0], [1], [0, 0, 1, 1], [], []>} : vector<8x5xf32>, vector<5x32xf32>, vector<8x32xf32> -> vector<8x32xf32>
    %c0_3 = arith.constant 0 : index
    %c0_4 = arith.constant 0 : index
    %3 = vector.load %arg3[%c0_3, %c0_4] : memref<1x32xf32, #tpu.memory_space<vmem>>, vector<1x32xf32>
    %4 = vector.broadcast %3 : vector<1x32xf32> to vector<8x32xf32>
    %5 = arith.addf %2, %4 : vector<8x32xf32>
    %6 = math.tanh %5 : vector<8x32xf32>
    %c0_5 = arith.constant 0 : index
    %c0_6 = arith.constant 0 : index
    %7 = vector.load %arg4[%c0_5, %c0_6] : memref<32x8xf32, #tpu.memory_space<vmem>>, vector<32x8xf32>
    %cst_7 = arith.constant dense<0.000000e+00> : vector<8x8xf32>
    %8 = tpu.matmul %6, %7, %cst_7 {dimension_numbers = #tpu.dot_dimension_numbers<[1], [0], [0], [1], [0, 0, 1, 1], [], []>} : vector<8x32xf32>, vector<32x8xf32>, vector<8x8xf32> -> vector<8x8xf32>
    %c0_8 = arith.constant 0 : index
    %c0_9 = arith.constant 0 : index
    %9 = vector.load %arg5[%c0_8, %c0_9] : memref<1x8xf32, #tpu.memory_space<vmem>>, vector<1x8xf32>
    %10 = vector.broadcast %9 : vector<1x8xf32> to vector<8x8xf32>
    %11 = arith.addf %8, %10 : vector<8x8xf32>
    %c0_10 = arith.constant 0 : index
    %c0_11 = arith.constant 0 : index
    %12 = vector.load %arg6[%c0_10, %c0_11] : memref<8x8xf32, #tpu.memory_space<vmem>>, vector<8x8xf32>
    tpu.vector_store %arg6[%c0_10, %c0_11], %11 {strides = array<i32>} : memref<8x8xf32, #tpu.memory_space<vmem>>, vector<8x8xf32>,
    return
  }
  func.func @transform_0(%arg0: i32) -> (i32, i32) {
    %c0_i32 = arith.constant 0 : i32
    %c0_i32_0 = arith.constant 0 : i32
    return %arg0, %c0_i32 : i32, i32
  }
  func.func @transform_1(%arg0: i32) -> (i32, i32) {
    %c0_i32 = arith.constant 0 : i32
    %c0_i32_0 = arith.constant 0 : i32
    %c0_i32_1 = arith.constant 0 : i32
    return %c0_i32, %c0_i32_0 : i32, i32
  }
  func.func @transform_2(%arg0: i32) -> (i32, i32) {
    %c0_i32 = arith.constant 0 : i32
    %c0_i32_0 = arith.constant 0 : i32
    %c0_i32_1 = arith.constant 0 : i32
    return %c0_i32, %c0_i32_0 : i32, i32
  }
  func.func @transform_3(%arg0: i32) -> (i32, i32) {
    %c0_i32 = arith.constant 0 : i32
    %c0_i32_0 = arith.constant 0 : i32
    %c0_i32_1 = arith.constant 0 : i32
    return %c0_i32, %c0_i32_0 : i32, i32
  }
  func.func @transform_4(%arg0: i32) -> (i32, i32) {
    %c0_i32 = arith.constant 0 : i32
    %c0_i32_0 = arith.constant 0 : i32
    %c0_i32_1 = arith.constant 0 : i32
    return %c0_i32, %c0_i32_0 : i32, i32
  }
  func.func @transform_5(%arg0: i32) -> (i32, i32) {
    %c0_i32 = arith.constant 0 : i32
    %c0_i32_0 = arith.constant 0 : i32
    return %arg0, %c0_i32 : i32, i32
  }
}

</mosaic_0001>

<bundles_post_ra>
// kernel: actor_critic_forward.1
= control target key start
LH: loop header
LB: loop body
LE: loop exit
PB: predicated region body
PF: predicated region fallthrough
CT: control target
= control target key end

     0   :  { %vm33_vm0 = vcmask 1044480   ;;  %vm29_vm1 = vcmask 39936   ;;  %v238_v0 = vmov 0.0   ;;  %vm239_vm2 = vmmov 0   ;;  %s298_s1 = inlined_call_operand.vmem [shape: f32[5,32], index: 1, kind: input, shape index: {}]   ;;  %s299_s0 = inlined_call_operand.vmem [shape: f32[8,5], index: 0, kind: input, shape index: {}]   ;;  %s300_s3 = inlined_call_operand.vmem [shape: f32[32,8], index: 3, kind: input, shape index: {}]   ;;  %s301_s2 = inlined_call_operand.vmem [shape: f32[1,32], index: 2, kind: input, shape index: {}]   ;;  %s302_s4 = inlined_call_operand.vmem [shape: f32[1,8], index: 4, kind: input, shape index: {}]   ;;  %s303_s5 = inlined_call_operand.vmem [shape: f32[8,8], index: 5, kind: output, shape index: {}]  }
   0x1   :  { %211 = vmatprep.subr.mxu0 %v238_v0  ;;  %v21_v1 = vld [vmem:[%s298_s1] sm:$0x1f]  ;;  %213 = vmatprep.mubr.msk.f32.mxu0 %vm239_vm2, %v238_v0  ;;  %v240_v3 = vmov 0.0|0.0   ;;  %v109_v5 = vld [vmem:[%s300_s3 + $0x8] sm:$0xff]  ;;  %v110_v6 = vld [vmem:[%s300_s3 + $0x10] sm:$0xff]  ;;  %vm119_vm3 = vcmask 261120  }
   0x2   :  { %v20_v2 = vld [vmem:[%s299_s0] sm:$0xff]  ;;  %212 = vmatpush3.msk.msra.mxu0 %vm33_vm0, %v21_v1  ;;  %224 = vmatprep.mubr.msk.f32.mxu1 %vm239_vm2, %v238_v0  ;;  %v111_v8 = vld [vmem:[%s300_s3 + $0x18] sm:$0xff]  ;;  %vm193_vm4 = vcmask 64512  }
   0x3   :  { %214 = vmatmul.mubr.msk.f32.vlgmr.msra.gmra.mrb[0].mxu0 %vm29_vm1, %v20_v2  ;;  %227 = vmatprep.subr.bf16.mxu1 %v240_v3  ;;  %v108_v4 = vld [vmem:[%s300_s3] sm:$0xff]  ;;  %v231_v9 = vpack.c.bf16 %v111_v8, %v110_v6 }
   0x4   :  { %v228_v7 = vpack.c.bf16 %v109_v5, %v108_v4  ;;  %v199_v10 = vld [vmem:[%s301_s2] ss:$0 sm:$0xff] }
   0x5   :  { %v202_v15 = vld [vmem:[%s302_s4] ss:$0 sm:$0xff] }
   0x6   :  { %229 = vmatpush3.bf16.msra.mxu1 %v228_v7 }
   0x7   :  { %230 = vmatprep.subr.bf16.mxu1 %v240_v3 }
   0xa   :  { %232 = vmatpush3.bf16.msra.mxu1 %v231_v9 }
  0xd6   :  { %v103_v11 = vpop.f32.mrb[0].mxu0 }
  0xd7   :  { %v104_v12 = vadd.f32 %v199_v10, %v103_v11  ;;  %v215_v13 = vpop.f32.mrb[1].mxu0 }
  0xd9   :  { %236 = vtanh.f32 %v104_v12 }
  0xe3   :  { %v237_v14 = vpop.eup %236 }
  0xe4   :  { %225 = vmatmul.mubr.msk.f32.vlgmr.msra.gmra.mrb[0].mxu1 %vm119_vm3, %v237_v14 }
 0x1b7   :  { %v189_v16 = vpop.f32.mrb[0].mxu1 }
 0x1b8   :  { %v190_v17 = vadd.f32 %v202_v15, %v189_v16  ;;  %v226_v18 = vpop.f32.mrb[1].mxu1 }
 0x1ba   :  { %194 = vst.msk [vmem:[%s303_s5] sm:$0xff] %vm193_vm4, %v190_v17 }

</bundles_post_ra>
